<compile_context>
chip_gen: v6e
topology: v6e:2x2x1
jax: 0.10.0
libtpu: 0.0.40
codegen_flags: <defaults>
</compile_context>

<pallas_src>
import functools

import jax
import jax.numpy as jnp
from jax.experimental import pallas as pl
from jax.experimental.pallas import tpu as pltpu


def _sublane_multiple(dtype):
    # f32 -> 8, bf16 -> 16, int8/fp8 -> 32 (packed sublanes).
    return max(8, 32 // jnp.dtype(dtype).itemsize)


def _vmem_capacity_bytes():
    try:
        info = pltpu.get_tpu_info()
        cap = getattr(info, "vmem_capacity_bytes", None)
        if cap:
            return int(cap)
    except Exception:
        pass
    return 64 * 1024 * 1024  # conservative default (v7x per-TensorCore VMEM)


def _residual_block_kernel(x_ref, *rest, nseg, C_in, C_inp, C_out, L, Lout, K,
                           dilation, peff, o_padding, a, b, mm_dtype,
                           identity_residual):
    if identity_residual:
        pvec_ref, w1_ref, w2_ref, out_ref, pad_ref = rest
        res_ref = None
    else:
        res_ref, pvec_ref, w1_ref, w2_ref, out_ref, pad_ref = rest

    # Input slab (C_in, nseg*L): length (and folded batch) on the 128-lane axis.
    xin = x_ref[0] if len(x_ref.shape) == 3 else x_ref[...]
    x = xin.astype(jnp.float32)

    pvec = pvec_ref[...]                       # (Cmax, 4) f32, tiny
    s1 = pvec[:C_in, 0:1]                      # bn1 scale
    t1 = pvec[:C_in, 1:2]                      # bn1 shift
    b1f = pvec[:C_in, 2:3]                     # conv1 bias with bn2 folded in
    b2 = pvec[:C_out, 3:4]                     # conv2 bias (unscaled, f32)

    # bn1 + ReLU (f32 VPU), conv1 (k=1 pointwise, bn2 folded) on the MXU,
    # ReLU.  dropout1/dropout2 are the identity in eval mode.
    h = jnp.maximum(x * s1 + t1, 0.0)
    h = jnp.dot(w1_ref[...], h.astype(mm_dtype),
                preferred_element_type=jnp.float32)
    h = jnp.maximum(h + b1f, 0.0)

    # Sublane-pad to C_inp rows (in f32, before the single mm_dtype cast) so the
    # K-tap concatenate below stays (8,128)/(16,128) tile aligned.
    if C_inp > C_in:
        h = jnp.concatenate(
            [h, jnp.zeros((C_inp - C_in, h.shape[1]), jnp.float32)], axis=0)
    h_mm = h.astype(mm_dtype)                  # one cast of the whole slab

    Lpad = L + 2 * peff + o_padding
    tail = peff + o_padding

    # Refresh halo columns UNCONDITIONALLY every grid step: scratch is per-core
    # and persists across steps; under v7x megacore sharding core 1 never runs
    # step 0, so this must not be gated on program_id.  The interior of every
    # segment is fully overwritten below.
    for n in range(nseg):
        base = n * Lpad
        if peff > 0:
            pad_ref[:, pl.ds(base, peff)] = jnp.zeros((C_inp, peff), mm_dtype)
        if tail > 0:
            pad_ref[:, pl.ds(base + peff + L, tail)] = jnp.zeros(
                (C_inp, tail), mm_dtype)
        pad_ref[:, pl.ds(base + peff, L)] = h_mm[:, n * L:(n + 1) * L]

    # conv2 (stride-1 ConvTranspose1d) == correlation of the zero-haloed buffer
    # with the k-flipped kernel: ONE im2col matmul on the MXU (bf16 in, f32 acc).
    pieces = []
    for k in range(K):
        cols = [pad_ref[:, pl.ds(n * Lpad + k * dilation, Lout)]
                for n in range(nseg)]
        pieces.append(cols[0] if nseg == 1 else jnp.concatenate(cols, axis=1))
    slab = pieces[0] if K == 1 else jnp.concatenate(pieces, axis=0)

    conv2_out = jnp.dot(w2_ref[...], slab,
                        preferred_element_type=jnp.float32) + b2

    # Epilogue in f32: out = a * residual + b * conv2_out  (b kept out of the
    # low-precision weights for accuracy).
    if identity_residual:
        res = x                                # residual == x, no second HBM read
    else:
        rin = res_ref[0] if len(res_ref.shape) == 3 else res_ref[...]
        res = rin.astype(jnp.float32)
    y = (a * res + b * conv2_out).astype(out_ref.dtype)
    if len(out_ref.shape) == 3:
        out_ref[0] = y
    else:
        out_ref[...] = y


def residual_block_1d_transpose_conv(x_ncl, params, *, kernelsize, stride,
                                     padding, dilation, o_padding, a, b,
                                     residual_ncl=None, eps=1e-5,
                                     matmul_dtype=jnp.bfloat16, out_dtype=None,
                                     fold_batch_into_lanes=None):
    if stride != 1:
        # TODO(synk): stride > 1 requires in-kernel zero-insertion (strided
        # scatter into the padded scratch) before the im2col matmul.
        raise NotImplementedError("stride > 1 not supported by this kernel")

    N, C_in, L = x_ncl.shape
    K = kernelsize
    C_out = params["w2"].shape[1]
    peff = dilation * (K - 1) - padding
    assert peff >= 0, "padding larger than dilated kernel extent not supported"
    Lout = (L - 1) * stride - 2 * padding + dilation * (K - 1) + o_padding + 1
    Lpad = L + 2 * peff + o_padding            # == Lout + (K - 1) * dilation

    if out_dtype is None:
        out_dtype = x_ncl.dtype

    identity_residual = residual_ncl is None
    if identity_residual:
        assert (C_out, Lout) == (C_in, L), (
            "upsample=None requires a shape-preserving conv2; otherwise pass "
            "the (upsampled) residual explicitly via residual_ncl")
    else:
        assert residual_ncl.shape == (N, C_out, Lout)

    # ---- parameter glue: fold bn1 -> scale/shift, bn2 -> conv1; flip conv2.
    f32 = jnp.float32
    s1 = params["gamma1"].astype(f32) / jnp.sqrt(params["rvar1"].astype(f32) + eps)
    t1 = params["beta1"].astype(f32) - params["rmean1"].astype(f32) * s1
    s2 = params["gamma2"].astype(f32) / jnp.sqrt(params["rvar2"].astype(f32) + eps)
    t2 = params["beta2"].astype(f32) - params["rmean2"].astype(f32) * s2
    w1f = (s2[:, None] * params["w1"].astype(f32)[:, :, 0].T).astype(matmul_dtype)
    b1f = s2 * params["b1"].astype(f32) + t2

    sub = _sublane_multiple(matmul_dtype)
    C_inp = ((C_in + sub - 1) // sub) * sub
    w2flip = jnp.transpose(jnp.flip(params["w2"].astype(f32), axis=2), (2, 0, 1))
    if C_inp > C_in:
        w2flip = jnp.pad(w2flip, ((0, 0), (0, C_inp - C_in), (0, 0)))
    w2f = w2flip.reshape(K * C_inp, C_out).T.astype(matmul_dtype)  # (C_out, K*C_inp)

    Cmax = max(C_in, C_out)
    pvec = jnp.zeros((Cmax, 4), f32)
    pvec = pvec.at[:C_in, 0].set(s1)
    pvec = pvec.at[:C_in, 1].set(t1)
    pvec = pvec.at[:C_in, 2].set(b1f)
    pvec = pvec.at[:C_out, 3].set(params["b2"].astype(f32))

    # ---- generation-aware VMEM budget + batch blocking.
    budget = int(0.75 * _vmem_capacity_bytes())   # ~48 MiB v7x, ~96 MiB v5e/v6e
    x_it = jnp.dtype(x_ncl.dtype).itemsize
    o_it = jnp.dtype(out_dtype).itemsize
    r_it = 0 if identity_residual else jnp.dtype(residual_ncl.dtype).itemsize
    m_it = jnp.dtype(matmul_dtype).itemsize

    def _need(nseg):
        tiles = 2 * nseg * (C_in * L * x_it + C_out * Lout * (o_it + r_it))
        fixed = 2 * (Cmax * 4 * 4 + C_in * C_in * m_it + C_out * K * C_inp * m_it)
        scratch = C_inp * nseg * Lpad * m_it
        inter = nseg * (C_inp * L * 4 + K * C_inp * Lout * m_it
                        + 2 * C_out * Lout * 4)
        return tiles + fixed + scratch + inter

    fold = fold_batch_into_lanes
    if fold is None:
        fold = (L % 128 != 0) or (Lout % 128 != 0) or (L < 256)

    nb = 1
    if fold:
        best_key = None
        for cand in range(1, N + 1):
            if N % cand:
                continue
            lane_ok = (cand == N) or (cand * L % 128 == 0
                                      and cand * Lout % 128 == 0)
            if not lane_ok or _need(cand) > budget:
                continue
            steps = N // cand
            # prefer >=2 steps, then an even step count (two v7x TCs), then size
            key = (steps >= 2, steps % 2 == 0, cand)
            if best_key is None or key > best_key:
                best_key, nb = key, cand
        if best_key is None:
            fold = False                       # fall back to per-batch NCL blocks
    # TODO(synk): for very long L that overflows the VMEM budget even at one
    # batch per step, add an L-chunk grid axis with a peff+(K-1)*dilation halo.

    nseg = nb if fold else 1
    vmem_limit = int(min(budget, max(32 * 1024 * 1024, 2 * _need(nseg))))

    kernel = functools.partial(
        _residual_block_kernel, nseg=nseg, C_in=C_in, C_inp=C_inp, C_out=C_out,
        L=L, Lout=Lout, K=K, dilation=dilation, peff=peff, o_padding=o_padding,
        a=float(a), b=float(b), mm_dtype=matmul_dtype,
        identity_residual=identity_residual)

    if fold:
        # Lane-dense layout: batch folded onto lanes (layout plumbing only).
        grid = (N // nb,)
        x_in = jnp.transpose(x_ncl, (1, 0, 2)).reshape(C_in, N * L)
        in_arrays = [x_in]
        in_specs = [pl.BlockSpec((C_in, nseg * L), lambda i: (0, i))]
        if not identity_residual:
            res_in = jnp.transpose(residual_ncl, (1, 0, 2)).reshape(C_out, N * Lout)
            in_arrays.append(res_in)
            in_specs.append(pl.BlockSpec((C_out, nseg * Lout), lambda i: (0, i)))
        out_shape = jax.ShapeDtypeStruct((C_out, N * Lout), out_dtype)
        out_spec = pl.BlockSpec((C_out, nseg * Lout), lambda i: (0, i))
    else:
        # Native NCL blocks, one batch item per grid step (L already lane-dense).
        grid = (N,)
        in_arrays = [x_ncl]
        in_specs = [pl.BlockSpec((1, C_in, L), lambda i: (i, 0, 0))]
        if not identity_residual:
            in_arrays.append(residual_ncl)
            in_specs.append(pl.BlockSpec((1, C_out, Lout), lambda i: (i, 0, 0)))
        out_shape = jax.ShapeDtypeStruct((N, C_out, Lout), out_dtype)
        out_spec = pl.BlockSpec((1, C_out, Lout), lambda i: (i, 0, 0))

    in_arrays += [pvec, w1f, w2f]
    in_specs += [
        pl.BlockSpec((Cmax, 4), lambda i: (0, 0)),
        pl.BlockSpec((C_in, C_in), lambda i: (0, 0)),
        pl.BlockSpec((C_out, K * C_inp), lambda i: (0, 0)),
    ]

    out = pl.pallas_call(
        kernel,
        out_shape=out_shape,
        grid_spec=pltpu.PrefetchScalarGridSpec(
            num_scalar_prefetch=0,
            grid=grid,
            in_specs=in_specs,
            out_specs=out_spec,
            scratch_shapes=[pltpu.VMEM((C_inp, nseg * Lpad), matmul_dtype)]),
        compiler_params=pltpu.CompilerParams(
            dimension_semantics=("parallel",),
            vmem_limit_bytes=vmem_limit),
    )(*in_arrays)

    if fold:
        out = jnp.transpose(out.reshape(C_out, N, Lout), (1, 0, 2))
    return out


def _ref_forward(x_ncl, params, *, kernelsize, stride, padding, dilation,
                 o_padding, a, b, eps=1e-5):
    """Pure-JAX reference using the direct scatter definition of ConvTranspose1d."""
    x = jnp.transpose(x_ncl, (0, 2, 1)).astype(jnp.float32)  # NLC
    s1 = params["gamma1"] / jnp.sqrt(params["rvar1"] + eps)
    t1 = params["beta1"] - params["rmean1"] * s1
    h = jnp.maximum(x * s1 + t1, 0.0)
    h = jnp.einsum("nlc,cd->nld", h, params["w1"][:, :, 0]) + params["b1"]
    s2 = params["gamma2"] / jnp.sqrt(params["rvar2"] + eps)
    t2 = params["beta2"] - params["rmean2"] * s2
    h = jnp.maximum(h * s2 + t2, 0.0)

    W2 = params["w2"]
    K = kernelsize
    N, L, _ = h.shape
    C_out = W2.shape[1]
    Lout = (L - 1) * stride - 2 * padding + dilation * (K - 1) + o_padding + 1
    out = jnp.zeros((N, Lout, C_out), jnp.float32)
    for i in range(L):
        for k in range(K):
            j = i * stride - padding + k * dilation
            if 0 <= j < Lout:
                out = out.at[:, j, :].add(h[:, i, :] @ W2[:, :, k])
    out = out + params["b2"]
    y = a * x + b * out
    return jnp.transpose(y, (0, 2, 1))


if __name__ == "__main__":
    # Module config (upsample=None => shapes preserved by conv2)
    N, C_in, C_out, L = 2, 8, 8, 16
    kernelsize, stride, padding, dilation, o_padding = 3, 1, 1, 1, 0
    a_coef, b_coef = 2.0, 0.3

    key = jax.random.PRNGKey(0)
    ks = jax.random.split(key, 13)
    params = dict(
        gamma1=1.0 + 0.1 * jax.random.normal(ks[0], (C_in,), jnp.float32),
        beta1=0.1 * jax.random.normal(ks[1], (C_in,), jnp.float32),
        rmean1=0.1 * jax.random.normal(ks[2], (C_in,), jnp.float32),
        rvar1=1.0 + 0.1 * jax.random.uniform(ks[3], (C_in,), jnp.float32),
        w1=0.3 * jax.random.normal(ks[4], (C_in, C_in, 1), jnp.float32),
        b1=0.1 * jax.random.normal(ks[5], (C_in,), jnp.float32),
        gamma2=1.0 + 0.1 * jax.random.normal(ks[6], (C_in,), jnp.float32),
        beta2=0.1 * jax.random.normal(ks[7], (C_in,), jnp.float32),
        rmean2=0.1 * jax.random.normal(ks[8], (C_in,), jnp.float32),
        rvar2=1.0 + 0.1 * jax.random.uniform(ks[9], (C_in,), jnp.float32),
        w2=0.3 * jax.random.normal(ks[10], (C_in, C_out, kernelsize), jnp.float32),
        b2=0.1 * jax.random.normal(ks[11], (C_out,), jnp.float32),
    )
    x = jax.random.normal(ks[12], (N, C_in, L), jnp.float32)

    cfg = dict(kernelsize=kernelsize, stride=stride, padding=padding,
               dilation=dilation, o_padding=o_padding, a=a_coef, b=b_coef)
    ref = _ref_forward(x, params, **cfg)

    # 1) f32 matmul, lane-dense fold, identity-residual fast path (tight check).
    out_f32 = residual_block_1d_transpose_conv(x, params, matmul_dtype=jnp.float32,
                                               **cfg)
    out_f32 = jax.block_until_ready(out_f32)
    assert out_f32.shape == (N, C_out, L), out_f32.shape
    assert jnp.allclose(out_f32, ref, rtol=2e-3, atol=2e-3), (
        float(jnp.max(jnp.abs(out_f32 - ref))))

    # 2) default bf16 MXU path (lane-dense fold + bf16 scratch), looser tolerance.
    out_bf16 = residual_block_1d_transpose_conv(x, params, **cfg)
    out_bf16 = jax.block_until_ready(out_bf16)
    assert out_bf16.shape == (N, C_out, L), out_bf16.shape
    assert jnp.allclose(out_bf16, ref, rtol=3e-2, atol=8e-2), (
        float(jnp.max(jnp.abs(out_bf16 - ref))))

    # 3) native NCL per-batch path with an explicitly passed residual (== x),
    #    exercising the non-folded layout and the explicit-residual branch.
    out_ncl = residual_block_1d_transpose_conv(
        x, params, residual_ncl=x, matmul_dtype=jnp.float32,
        fold_batch_into_lanes=False, **cfg)
    out_ncl = jax.block_until_ready(out_ncl)
    assert out_ncl.shape == (N, C_out, L), out_ncl.shape
    assert jnp.allclose(out_ncl, ref, rtol=2e-3, atol=2e-3), (
        float(jnp.max(jnp.abs(out_ncl - ref))))

    print("KERNEL_OK")
</pallas_src>

<mosaic_0001>
module attributes {stable_mosaic.version = 11 : i64} {
  func.func @_residual_block_kernel(%arg0: i32, %arg1: memref<8x32xf32, #tpu.memory_space<vmem>>, %arg2: memref<8x4xf32, #tpu.memory_space<vmem>>, %arg3: memref<8x8xf32, #tpu.memory_space<vmem>>, %arg4: memref<8x24xf32, #tpu.memory_space<vmem>>, %arg5: memref<8x32xf32, #tpu.memory_space<vmem>>, %arg6: memref<8x36xf32, #tpu.memory_space<vmem>>) attributes {dimension_semantics = [#tpu.dimension_semantics<parallel>], iteration_bounds = array<i64: 1>, scalar_prefetch = 0 : i64, scratch_operands = 1 : i64, tpu.core_type = #tpu.core_type<tc>, window_params = [{transform_indices = @transform_0, window_bounds = array<i64: 8, 32>}, {pipeline_mode = #tpu.pipeline_mode<synchronous>, transform_indices = @transform_1, window_bounds = array<i64: 8, 4>}, {pipeline_mode = #tpu.pipeline_mode<synchronous>, transform_indices = @transform_2, window_bounds = array<i64: 8, 8>}, {pipeline_mode = #tpu.pipeline_mode<synchronous>, transform_indices = @transform_3, window_bounds = array<i64: 8, 24>}, {transform_indices = @transform_4, window_bounds = array<i64: 8, 32>}]} {
    %c0 = arith.constant 0 : index
    %c0_0 = arith.constant 0 : index
    %0 = vector.load %arg1[%c0, %c0_0] : memref<8x32xf32, #tpu.memory_space<vmem>>, vector<8x32xf32>
    %c0_1 = arith.constant 0 : index
    %c0_2 = arith.constant 0 : index
    %1 = vector.load %arg2[%c0_1, %c0_2] : memref<8x4xf32, #tpu.memory_space<vmem>>, vector<8x4xf32>
    %2 = vector.extract_strided_slice %1 {offsets = [0, 0], sizes = [8, 1], strides = [1, 1]} : vector<8x4xf32> to vector<8x1xf32>
    %3 = vector.extract_strided_slice %1 {offsets = [0, 1], sizes = [8, 1], strides = [1, 1]} : vector<8x4xf32> to vector<8x1xf32>
    %4 = vector.extract_strided_slice %1 {offsets = [0, 2], sizes = [8, 1], strides = [1, 1]} : vector<8x4xf32> to vector<8x1xf32>
    %5 = vector.extract_strided_slice %1 {offsets = [0, 3], sizes = [8, 1], strides = [1, 1]} : vector<8x4xf32> to vector<8x1xf32>
    %6 = vector.broadcast %2 : vector<8x1xf32> to vector<8x32xf32>
    %7 = arith.mulf %0, %6 : vector<8x32xf32>
    %8 = vector.broadcast %3 : vector<8x1xf32> to vector<8x32xf32>
    %9 = arith.addf %7, %8 : vector<8x32xf32>
    %cst = arith.constant 0.000000e+00 : f32
    %10 = vector.broadcast %cst : f32 to vector<8x32xf32>
    %11 = arith.maximumf %9, %10 : vector<8x32xf32>
    %c0_3 = arith.constant 0 : index
    %c0_4 = arith.constant 0 : index
    %12 = vector.load %arg3[%c0_3, %c0_4] : memref<8x8xf32, #tpu.memory_space<vmem>>, vector<8x8xf32>
    %cst_5 = arith.constant dense<0.000000e+00> : vector<8x32xf32>
    %13 = tpu.matmul %12, %11, %cst_5 {dimension_numbers = #tpu.dot_dimension_numbers<[1], [0], [0], [1], [0, 0, 1, 1], [], []>} : vector<8x8xf32>, vector<8x32xf32>, vector<8x32xf32> -> vector<8x32xf32>
    %14 = vector.broadcast %4 : vector<8x1xf32> to vector<8x32xf32>
    %15 = arith.addf %13, %14 : vector<8x32xf32>
    %cst_6 = arith.constant 0.000000e+00 : f32
    %16 = vector.broadcast %cst_6 : f32 to vector<8x32xf32>
    %17 = arith.maximumf %15, %16 : vector<8x32xf32>
    %cst_7 = arith.constant 0.000000e+00 : f32
    %18 = vector.broadcast %cst_7 : f32 to vector<8x1xf32>
    %c0_8 = arith.constant 0 : index
    %c0_9 = arith.constant 0 : index
    %19 = vector.load %arg6[%c0_8, %c0_9] : memref<8x36xf32, #tpu.memory_space<vmem>>, vector<8x1xf32>
    tpu.vector_store %arg6[%c0_8, %c0_9], %18 {strides = array<i32>} : memref<8x36xf32, #tpu.memory_space<vmem>>, vector<8x1xf32>,
    %cst_10 = arith.constant 0.000000e+00 : f32
    %20 = vector.broadcast %cst_10 : f32 to vector<8x1xf32>
    %c0_11 = arith.constant 0 : index
    %c17 = arith.constant 17 : index
    %21 = vector.load %arg6[%c0_11, %c17] : memref<8x36xf32, #tpu.memory_space<vmem>>, vector<8x1xf32>
    tpu.vector_store %arg6[%c0_11, %c17], %20 {strides = array<i32>} : memref<8x36xf32, #tpu.memory_space<vmem>>, vector<8x1xf32>,
    %22 = vector.extract_strided_slice %17 {offsets = [0, 0], sizes = [8, 16], strides = [1, 1]} : vector<8x32xf32> to vector<8x16xf32>
    %c0_12 = arith.constant 0 : index
    %c1 = arith.constant 1 : index
    %23 = vector.load %arg6[%c0_12, %c1] : memref<8x36xf32, #tpu.memory_space<vmem>>, vector<8x16xf32>
    tpu.vector_store %arg6[%c0_12, %c1], %22 {strides = array<i32>} : memref<8x36xf32, #tpu.memory_space<vmem>>, vector<8x16xf32>,
    %cst_13 = arith.constant 0.000000e+00 : f32
    %24 = vector.broadcast %cst_13 : f32 to vector<8x1xf32>
    %c0_14 = arith.constant 0 : index
    %c18 = arith.constant 18 : index
    %25 = vector.load %arg6[%c0_14, %c18] : memref<8x36xf32, #tpu.memory_space<vmem>>, vector<8x1xf32>
    tpu.vector_store %arg6[%c0_14, %c18], %24 {strides = array<i32>} : memref<8x36xf32, #tpu.memory_space<vmem>>, vector<8x1xf32>,
    %cst_15 = arith.constant 0.000000e+00 : f32
    %26 = vector.broadcast %cst_15 : f32 to vector<8x1xf32>
    %c0_16 = arith.constant 0 : index
    %c35 = arith.constant 35 : index
    %27 = vector.load %arg6[%c0_16, %c35] : memref<8x36xf32, #tpu.memory_space<vmem>>, vector<8x1xf32>
    tpu.vector_store %arg6[%c0_16, %c35], %26 {strides = array<i32>} : memref<8x36xf32, #tpu.memory_space<vmem>>, vector<8x1xf32>,
    %28 = vector.extract_strided_slice %17 {offsets = [0, 16], sizes = [8, 16], strides = [1, 1]} : vector<8x32xf32> to vector<8x16xf32>
    %c0_17 = arith.constant 0 : index
    %c19 = arith.constant 19 : index
    %29 = vector.load %arg6[%c0_17, %c19] : memref<8x36xf32, #tpu.memory_space<vmem>>, vector<8x16xf32>
    tpu.vector_store %arg6[%c0_17, %c19], %28 {strides = array<i32>} : memref<8x36xf32, #tpu.memory_space<vmem>>, vector<8x16xf32>,
    %c0_18 = arith.constant 0 : index
    %c0_19 = arith.constant 0 : index
    %30 = vector.load %arg6[%c0_18, %c0_19] : memref<8x36xf32, #tpu.memory_space<vmem>>, vector<8x16xf32>
    %c0_20 = arith.constant 0 : index
    %c18_21 = arith.constant 18 : index
    %31 = vector.load %arg6[%c0_20, %c18_21] : memref<8x36xf32, #tpu.memory_space<vmem>>, vector<8x16xf32>
    %32 = tpu.concatenate %30, %31 in 1 : vector<8x16xf32>, vector<8x16xf32> -> vector<8x32xf32>
    %c0_22 = arith.constant 0 : index
    %c1_23 = arith.constant 1 : index
    %33 = vector.load %arg6[%c0_22, %c1_23] : memref<8x36xf32, #tpu.memory_space<vmem>>, vector<8x16xf32>
    %c0_24 = arith.constant 0 : index
    %c19_25 = arith.constant 19 : index
    %34 = vector.load %arg6[%c0_24, %c19_25] : memref<8x36xf32, #tpu.memory_space<vmem>>, vector<8x16xf32>
    %35 = tpu.concatenate %33, %34 in 1 : vector<8x16xf32>, vector<8x16xf32> -> vector<8x32xf32>
    %c0_26 = arith.constant 0 : index
    %c2 = arith.constant 2 : index
    %36 = vector.load %arg6[%c0_26, %c2] : memref<8x36xf32, #tpu.memory_space<vmem>>, vector<8x16xf32>
    %c0_27 = arith.constant 0 : index
    %c20 = arith.constant 20 : index
    %37 = vector.load %arg6[%c0_27, %c20] : memref<8x36xf32, #tpu.memory_space<vmem>>, vector<8x16xf32>
    %38 = tpu.concatenate %36, %37 in 1 : vector<8x16xf32>, vector<8x16xf32> -> vector<8x32xf32>
    %39 = tpu.concatenate %32, %35, %38 in 0 : vector<8x32xf32>, vector<8x32xf32>, vector<8x32xf32> -> vector<24x32xf32>
    %c0_28 = arith.constant 0 : index
    %c0_29 = arith.constant 0 : index
    %40 = vector.load %arg4[%c0_28, %c0_29] : memref<8x24xf32, #tpu.memory_space<vmem>>, vector<8x24xf32>
    %cst_30 = arith.constant dense<0.000000e+00> : vector<8x32xf32>
    %41 = tpu.matmul %40, %39, %cst_30 {dimension_numbers = #tpu.dot_dimension_numbers<[1], [0], [0], [1], [0, 0, 1, 1], [], []>} : vector<8x24xf32>, vector<24x32xf32>, vector<8x32xf32> -> vector<8x32xf32>
    %42 = vector.broadcast %5 : vector<8x1xf32> to vector<8x32xf32>
    %43 = arith.addf %41, %42 : vector<8x32xf32>
    %cst_31 = arith.constant 2.000000e+00 : f32
    %44 = vector.broadcast %cst_31 : f32 to vector<8x32xf32>
    %45 = arith.mulf %44, %0 : vector<8x32xf32>
    %cst_32 = arith.constant 3.000000e-01 : f32
    %46 = vector.broadcast %cst_32 : f32 to vector<8x32xf32>
    %47 = arith.mulf %46, %43 : vector<8x32xf32>
    %48 = arith.addf %45, %47 : vector<8x32xf32>
    %c0_33 = arith.constant 0 : index
    %c0_34 = arith.constant 0 : index
    %49 = vector.load %arg5[%c0_33, %c0_34] : memref<8x32xf32, #tpu.memory_space<vmem>>, vector<8x32xf32>
    tpu.vector_store %arg5[%c0_33, %c0_34], %48 {strides = array<i32>} : memref<8x32xf32, #tpu.memory_space<vmem>>, vector<8x32xf32>,
    return
  }
  func.func @transform_0(%arg0: i32) -> (i32, i32) {
    %c0_i32 = arith.constant 0 : i32
    %c0_i32_0 = arith.constant 0 : i32
    return %c0_i32, %arg0 : i32, i32
  }
  func.func @transform_1(%arg0: i32) -> (i32, i32) {
    %c0_i32 = arith.constant 0 : i32
    %c0_i32_0 = arith.constant 0 : i32
    %c0_i32_1 = arith.constant 0 : i32
    return %c0_i32, %c0_i32_0 : i32, i32
  }
  func.func @transform_2(%arg0: i32) -> (i32, i32) {
    %c0_i32 = arith.constant 0 : i32
    %c0_i32_0 = arith.constant 0 : i32
    %c0_i32_1 = arith.constant 0 : i32
    return %c0_i32, %c0_i32_0 : i32, i32
  }
  func.func @transform_3(%arg0: i32) -> (i32, i32) {
    %c0_i32 = arith.constant 0 : i32
    %c0_i32_0 = arith.constant 0 : i32
    %c0_i32_1 = arith.constant 0 : i32
    return %c0_i32, %c0_i32_0 : i32, i32
  }
  func.func @transform_4(%arg0: i32) -> (i32, i32) {
    %c0_i32 = arith.constant 0 : i32
    %c0_i32_0 = arith.constant 0 : i32
    return %c0_i32, %arg0 : i32, i32
  }
}

</mosaic_0001>

<bundles_post_ra>
// kernel: tpu_custom_call.1
= control target key start
LH: loop header
LB: loop body
LE: loop exit
PB: predicated region body
PF: predicated region fallthrough
CT: control target
= control target key end

     0   :  { %9 = vsyncpa [#allocation4], 0  ;;  %s408_s0 = inlined_call_operand.vmem [shape: f32[8,32], index: 0, kind: input, shape index: {}]   ;;  %s409_s1 = inlined_call_operand.vmem [shape: f32[8,4], index: 1, kind: input, shape index: {}]   ;;  %s410_s2 = inlined_call_operand.hbm [shape: f32[8,8], index: 2, kind: input, shape index: {}]   ;;  %s411_s3 = inlined_call_operand.vmem [shape: f32[8,24], index: 3, kind: input, shape index: {}]   ;;  %s412_s4 = inlined_call_operand.hbm [shape: f32[8,32], index: 4, kind: output, shape index: {}]  }
   0x1   :  { %10 = vsyncpa [#allocation5], 0  ;;  %s344_s15 = smov [#allocation3]  }
   0x2   :  { %s21_s16 = sshll.u32 %s344_s15, 4  ;;  %s22_s16 = int_to_ptr.vmem [resolvable:$true] %s21_s16 }
   0x3   :  { %s308_s17 = scalar_lea.vmem %s22_s16, 128  ;;  %p313_p1 = scmp.lt.s32.totalorder %s22_s16, %s22_s16 }
   0x4   :  { %p309_p0 = scmp.ne.s32.totalorder %s22_s16, %s308_s17  ;;  %p314_p2 = scmp.lt.s32.totalorder %s308_s17, %s308_s17 }
   0x6   :  { %p315_p3 = por %p314_p2, %p313_p1 }
   0x8   :  { %p316_p4 = pnand %p315_p3, %p309_p0 }
   0xa   :  { %319 = shalt.err (!%p316_p4)
}
   0xb   :  { %24 = dma.hbm_to_vmem [thread:$0]  %s410_s2, 128, %s22_s16, [#allocation4]  }
   0xc   :  { %340 = dma.done.wait [#allocation4], 128  }
   0xd   :  { %341 = vsyncadd [#allocation4], 4294967168  ;;  %v345_v0 = vmov 0   ;;  %v31_v1 = vld [vmem:[%s409_s1] sm:$0xff]  ;;  %v346_v2 = vmov 1   ;;  %v347_v3 = vmov 0.0  }
   0xe   :  { %296 = vset.pattern.permute.xlu0 %v345_v0  ;;  %268 = vmatprep.subr.mxu0 %v347_v3  ;;  %vm348_vm0 = vmmov 0   ;;  %v349_v4 = vmov 2   ;;  %v30_v6 = vld [vmem:[%s408_s0] sm:$0xff]  ;;  %v44_v11 = vld [vmem:[#allocation3] sm:$0xff]  ;;  %vm49_vm1 = vcmask 64512   ;;  %vm124_vm2 = vcmask 7168  }
   0xf   :  { %34 = vperm.xlu0 %296, %v31_v1   ;;  %270 = vmatprep.mubr.msk.f32.mxu0 %vm348_vm0, %v347_v3  ;;  %vm126_vm3 = vcmask 146568   ;;  %125 = vst.msk [vmem:[#allocation2] sm:$0xff] %vm124_vm2, %v347_v3  ;;  %s350_s0 = smov 1   ;;  %s351_s22 = smov 3   ;;  %vm132_vm4 = vcmask 138248   ;;  %vm134_vm5 = vcmask 154768  }
  0x10   :  { %273 = vmatprep.subr.mxu1 %v347_v3  ;;  %279 = vmatprep.mubr.msk.f32.mxu1 %vm348_vm0, %v347_v3  ;;  %127 = vst.msk [vmem:[#allocation2] sm:$0xff] %vm126_vm3, %v347_v3  ;;  %vm136_vm6 = vcmask 294168   ;;  %vm141_vm7 = vcmask 285848   ;;  %v352_v19 = vmov 3   ;;  %s353_s23 = smov 124   ;;  %s354_s24 = smov 126  }
  0x11   :  { %298 = vset.pattern.permute.xlu1 %v349_v4  ;;  %s355_s25 = smov 125   ;;  %s356_s26 = smov 127   ;;  %vm148_vm8 = vcmask 130048   ;;  %v161_v27 = vld [vmem:[%s411_s3] sm:$0xff]  ;;  %vm166_vm9 = vcmask 195584   ;;  %v240_v31 = vmul.f32 2.0, %v30_v6 }
  0x12   :  { %46 = vperm.xlu1 %298, %v31_v1   ;;  %s357_s29 = smov [#allocation6]   ;;  %vm243_vm10 = vcmask 261120  }
  0x13   :  { %297 = vset.pattern.permute.xlu0 %v346_v2  ;;  %s251_s30 = sshll.u32 %s357_s29, 4  ;;  %s252_s30 = int_to_ptr.vmem [resolvable:$true] %s251_s30 }
  0x14   :  { %39 = vperm.xlu0 %297, %v31_v1   ;;  %s320_s5 = scalar_lea.vmem %s252_s30, 128  ;;  %p325_p6 = scmp.lt.s32.totalorder %s252_s30, %s252_s30 }
  0x15   :  { %p321_p5 = scmp.ne.s32.totalorder %s252_s30, %s320_s5  ;;  %p326_p7 = scmp.lt.s32.totalorder %s320_s5, %s320_s5 }
  0x17   :  { %p327_p8 = por %p326_p7, %p325_p6 }
  0x18   :  { %299 = vset.pattern.permute.xlu0 %v352_v19 }
  0x19   :  { %p328_p9 = pnand %p327_p8, %p321_p5 }
  0x8a   :  { %v35_v5 = vpop.permute.xlu0 %34 }
  0x8b   :  { %v37_v7 = vmul.f32 %v35_v5, %v30_v6 }
  0x8d   :  { %v47_v12 = vpop.permute.xlu1 %46 }
  0x8f   :  { %v40_v8 = vpop.permute.xlu0 %39 }
  0x90   :  { %v42_v9 = vadd.f32 %v40_v8, %v37_v7 }
  0x92   :  { %v43_v10 = vmax.f32 %v42_v9, 0.0 }
  0x94   :  { %269 = vmatpush3.msra.mxu0 %v43_v10 }
  0x95   :  { %271 = vmatmul.mubr.msk.f32.vlgmr.msra.gmra.mxu0 %vm49_vm1, %v44_v11 }
 0x155   :  { %v119_v13 = vpop.f32.mrf.mxu0 }
 0x156   :  { %v120_v14 = vadd.f32 %v119_v13, %v47_v12 }
 0x157   :  { %v272_v15 = vpop.f32.mrf.mxu0 }
 0x158   :  { %v123_v16 = vmax.f32 %v120_v14, 0.0 }
 0x15a   :  { %129 = vrot.lane.b32.xlu1 %v123_v16, %s350_s0 }
 0x15e   :  { %138 = vrot.lane.b32.xlu1 %v123_v16, %s351_s22 }
 0x1cc   :  { %v130_v17 = vpop.permute.xlu1 %129 }
 0x1cd   :  { %133 = vst.msk [vmem:[#allocation2] sm:$0xff] %vm132_vm4, %v130_v17 }
 0x1ce   :  { %135 = vst.msk [vmem:[#allocation2] sm:$0xff] %vm134_vm5, %v347_v3 }
 0x1cf   :  { %137 = vst.msk [vmem:[#allocation2] sm:$0xff] %vm136_vm6, %v347_v3 }
 0x1d0   :  { %v139_v18 = vpop.permute.xlu1 %138 }
 0x1d1   :  { %142 = vst.msk [vmem:[#allocation2] sm:$0xff] %vm141_vm7, %v139_v18 }
 0x1d8   :  { %v143_v20 = vld [vmem:[#allocation2] sm:$0xff] }
 0x1d9   :  { %157 = vrot.lane.b32.xlu1 %v143_v20, %s353_s23  ;;  %145 = vrot.lane.b32.xlu0 %v143_v20, %s354_s24 }
 0x1dd   :  { %153 = vrot.lane.b32.xlu1 %v143_v20, %s355_s25  ;;  %150 = vrot.lane.b32.xlu0 %v143_v20, %s356_s26 }
 0x1e1   :  { %163 = vperm.xlu0 %299, %v31_v1  }
 0x24b   :  { %v158_v21 = vpop.permute.xlu1 %157  ;;  %v146_v22 = vpop.permute.xlu0 %145 }
 0x24c   :  { %v160_v23 = vsel %vm148_vm8, %v146_v22, %v158_v21  ;;  %v149_v28 = vsel %vm148_vm8, %v143_v20, %v146_v22 }
 0x24d   :  { %274 = vmatpush3.msra.mxu1 %v160_v23 }
 0x24e   :  { %275 = vmatprep.subr.mxu1 %v347_v3 }
 0x24f   :  { %v154_v24 = vpop.permute.xlu1 %153  ;;  %v151_v25 = vpop.permute.xlu0 %150 }
 0x250   :  { %v156_v26 = vsel %vm148_vm8, %v151_v25, %v154_v24 }
 0x251   :  { %276 = vmatpush3.msra.mxu1 %v156_v26 }
 0x252   :  { %277 = vmatprep.subr.mxu1 %v347_v3 }
 0x253   :  { %278 = vmatpush3.msra.mxu1 %v149_v28 }
 0x254   :  { %280 = vmatmul.mubr.msk.f32.vlgmr.msra.gmra.mxu1 %vm166_vm9, %v161_v27 }
 0x25c   :  { %v164_v29 = vpop.permute.xlu0 %163 }
 0x314   :  { %v236_v30 = vpop.f32.mrf.mxu1 }
 0x315   :  { %v237_v32 = vadd.f32 %v236_v30, %v164_v29 }
 0x316   :  { %v281_v33 = vpop.f32.mrf.mxu1 }
 0x317   :  { %v241_v34 = vmul.f32 0.3, %v237_v32 }
 0x319   :  { %v242_v35 = vadd.f32 %v241_v34, %v240_v31 }
 0x31b   :  { %244 = vst.msk [vmem:[#allocation6] sm:$0xff] %vm243_vm10, %v242_v35 }
 0x31c   :  { %331 = shalt.err (!%p328_p9)
}
 0x31d   :  { %254 = dma.vmem_to_hbm [thread:$0]  %s252_s30, 128, %s412_s4, [#allocation5]  }
 0x31e   :  { %342 = dma.done.wait [#allocation5], 128  }
 0x31f   :  { %343 = vsyncadd [#allocation5], 4294967168 }
 0x320   :  { %258 = vsyncpa [#allocation4], 1 }
 0x321   :  { %259 = vsyncpa [#allocation5], 1 }

</bundles_post_ra>
